<compile_context>
chip_gen: v7x
topology: tpu7x:2x2x1
jax: 0.10.0
libtpu: 0.0.40
codegen_flags: <defaults>
</compile_context>

<pallas_src>
import functools
import math

import numpy as np
import jax
import jax.numpy as jnp
from jax.experimental import pallas as pl
from jax.experimental.pallas import tpu as pltpu


# ----------------------------------------------------------------------------
# Deterministic parameter construction (same constants as DiffJPEG __init__).
# ----------------------------------------------------------------------------
_Y_TABLE = np.array(
    [[16, 11, 10, 16, 24, 40, 51, 61],
     [12, 12, 14, 19, 26, 58, 60, 55],
     [14, 13, 16, 24, 40, 57, 69, 56],
     [14, 17, 22, 29, 51, 87, 80, 62],
     [18, 22, 37, 56, 68, 109, 103, 77],
     [24, 35, 55, 64, 81, 104, 113, 92],
     [49, 64, 78, 87, 103, 121, 120, 101],
     [72, 92, 95, 98, 112, 100, 103, 99]], dtype=np.float64)

_C_TABLE = np.full((8, 8), 99.0, dtype=np.float64)
_C_TABLE[:4, :4] = np.array(
    [[17, 18, 24, 47],
     [18, 21, 26, 66],
     [24, 26, 56, 99],
     [47, 66, 99, 99]], dtype=np.float64)


def _dct8_matrix():
    # Orthonormal 8-point DCT: A[u, x] = 0.5 * alpha[u] * cos((2x+1) u pi / 16).
    alpha = np.array([1.0 / np.sqrt(2.0)] + [1.0] * 7, dtype=np.float64)
    a = np.zeros((8, 8), dtype=np.float64)
    for u in range(8):
        for x in range(8):
            a[u, x] = 0.5 * alpha[u] * math.cos((2 * x + 1) * u * math.pi / 16.0)
    return a


_A8 = _dct8_matrix()


def quality_to_factor(quality):
    if quality < 50:
        q = 5000.0 / quality
    else:
        q = 200.0 - quality * 2.0
    return q / 100.0


# ----------------------------------------------------------------------------
# Host-side operator construction (cached per tile shape).
# ----------------------------------------------------------------------------
@functools.lru_cache(maxsize=None)
def _build_operators(th, tw):
    """Block-diagonal DCT/IDCT operators for a (th, tw) spatial tile.

    Luma:   coef = LY @ (y - 128) @ RY ;   rec = LY^T @ deq @ RY^T + 128
    Chroma: the 2x2 average pool and the 2x nearest upsample (both linear) are
            folded into the forward / inverse operators, so the chroma path
            maps a full-res (th, tw) centered plane directly to half-res DCT
            coefficients and back to a full-res centered plane.
    """
    a = _A8
    ident = np.eye

    ly = np.kron(ident(th // 8), a)        # (th, th)
    ry = np.kron(ident(tw // 8), a.T)      # (tw, tw)

    hh, hw = th // 2, tw // 2
    pr = np.zeros((hh, th))                # 2x2 avg pool, row half
    pr[np.arange(hh), 2 * np.arange(hh)] = 0.5
    pr[np.arange(hh), 2 * np.arange(hh) + 1] = 0.5
    pc = np.zeros((tw, hw))                # 2x2 avg pool, col half
    pc[2 * np.arange(hw), np.arange(hw)] = 0.5
    pc[2 * np.arange(hw) + 1, np.arange(hw)] = 0.5
    ur = np.zeros((th, hh))                # 2x nearest upsample, rows
    ur[2 * np.arange(hh), np.arange(hh)] = 1.0
    ur[2 * np.arange(hh) + 1, np.arange(hh)] = 1.0
    uc = np.zeros((hw, tw))                # 2x nearest upsample, cols
    uc[np.arange(hw), 2 * np.arange(hw)] = 1.0
    uc[np.arange(hw), 2 * np.arange(hw) + 1] = 1.0

    lc = np.kron(ident(th // 16), a)       # (th/2, th/2)
    rc = np.kron(ident(tw // 16), a.T)     # (tw/2, tw/2)

    ops = (ly, ry, ly.T, ry.T,             # luma fwd / inv
           lc @ pr, pc @ rc,               # chroma fwd (pool folded)
           ur @ lc.T, rc.T @ uc)           # chroma inv (upsample folded)
    return tuple(np.asarray(o, dtype=np.float32) for o in ops)


def _pick_tile(dim, cap, lane_dim):
    """Largest tile edge <= cap that divides `dim` and is a multiple of 16; the
    lane dim must additionally be a multiple of 128 unless it spans `dim`."""
    if dim <= cap:
        return dim
    cands = [t for t in range(16, cap + 1, 16)
             if dim % t == 0 and (not lane_dim or t % 128 == 0)]
    return max(cands) if cands else dim    # full dim is always a legal block


# ----------------------------------------------------------------------------
# The fused Pallas kernel.
# ----------------------------------------------------------------------------
def _diff_jpeg_kernel(x_ref, ly_ref, ry_ref, lyt_ref, ryt_ref,
                      lcf_ref, rcf_ref, lci_ref, rci_ref,
                      qty_ref, iqty_ref, qtc_ref, iqtc_ref, o_ref):
    # x_ref / o_ref: (3, TH, TW) RGB tile in [0, 1].
    r = x_ref[0, :, :] * 255.0
    g = x_ref[1, :, :] * 255.0
    b = x_ref[2, :, :] * 255.0

    # RGB -> YCbCr (JPEG).  Chroma stays centered (no +128): the DCT would
    # subtract it again and YCbCr->RGB re-subtracts it as well.
    y = 0.299 * r + 0.587 * g + 0.114 * b - 128.0
    cb = -0.168736 * r - 0.331264 * g + 0.5 * b
    cr = 0.5 * r - 0.418688 * g - 0.081312 * b

    def mm(lhs, rhs):
        return jnp.dot(lhs, rhs, preferred_element_type=jnp.float32)

    def quant_dequant(coef, qt, iqt):
        q = coef * iqt                     # reciprocal table: multiply, not divide
        qr = jnp.round(q)
        q = qr + (q - qr) ** 3             # diff_round (differentiable rounding)
        return q * qt

    # --- luma: blockwise 2-D DCT -> quant -> dequant -> blockwise 2-D IDCT ---
    y_coef = mm(mm(ly_ref[...], y), ry_ref[...])
    y_deq = quant_dequant(y_coef, qty_ref[...], iqty_ref[...])
    y_rec = mm(mm(lyt_ref[...], y_deq), ryt_ref[...]) + 128.0

    # --- chroma: 2x2 avg-pool + DCT folded into (lcf, rcf); IDCT + 2x nearest
    #     upsample folded into (lci, rci).  Output stays centered. ---
    def chroma(c):
        coef = mm(mm(lcf_ref[...], c), rcf_ref[...])
        deq = quant_dequant(coef, qtc_ref[...], iqtc_ref[...])
        return mm(mm(lci_ref[...], deq), rci_ref[...])

    cb_rec = chroma(cb)
    cr_rec = chroma(cr)

    # --- YCbCr -> RGB, clamp to [0, 255], back to [0, 1] ---
    r_out = y_rec + 1.402 * cr_rec
    g_out = y_rec - 0.344136 * cb_rec - 0.714136 * cr_rec
    b_out = y_rec + 1.772 * cb_rec
    inv255 = 1.0 / 255.0
    o_ref[0, :, :] = jnp.clip(r_out, 0.0, 255.0) * inv255
    o_ref[1, :, :] = jnp.clip(g_out, 0.0, 255.0) * inv255
    o_ref[2, :, :] = jnp.clip(b_out, 0.0, 255.0) * inv255


# ----------------------------------------------------------------------------
# Public wrapper.
# ----------------------------------------------------------------------------
def diff_jpeg(x, quality=80):
    """DiffJPEG forward.  x: (B, 3, H, W) float32 in [0, 1].  Returns same shape."""
    # TODO(synk): per-batch torch.Tensor `quality` path not implemented; only a
    #             scalar int quality is supported.
    assert isinstance(quality, int) and 1 <= quality <= 100
    B, C, H, W = x.shape
    assert C == 3 and H % 16 == 0 and W % 16 == 0
    factor = quality_to_factor(quality)
    x = x.astype(jnp.float32)

    # Tile: sublane dim capped at 128, lane dim at 256 -> lane-dense stores and
    # large MXU matmuls while keeping the kron operators / VMEM footprint small.
    th = _pick_tile(H, 128, lane_dim=False)
    tw = _pick_tile(W, 256, lane_dim=True)

    ops = _build_operators(th, tw)
    qty = np.tile(_Y_TABLE, (th // 8, tw // 8)) * factor
    qtc = np.tile(_C_TABLE, (th // 16, tw // 16)) * factor
    tables = (qty, 1.0 / qty, qtc, 1.0 / qtc)
    consts = [jnp.asarray(c, dtype=jnp.float32) for c in (*ops, *tables)]

    img_spec = pl.BlockSpec((None, 3, th, tw), lambda bi, i, j: (bi, 0, i, j))

    def const_spec(c):
        # Full-array block, fixed block index -> fetched once, VMEM-resident.
        return pl.BlockSpec(c.shape, lambda bi, i, j: (0, 0))

    grid_spec = pltpu.PrefetchScalarGridSpec(
        num_scalar_prefetch=0,
        grid=(B, H // th, W // tw),
        in_specs=[img_spec] + [const_spec(c) for c in consts],
        out_specs=img_spec,
    )
    return pl.pallas_call(
        _diff_jpeg_kernel,
        out_shape=jax.ShapeDtypeStruct((B, 3, H, W), jnp.float32),
        grid_spec=grid_spec,
        compiler_params=pltpu.CompilerParams(
            dimension_semantics=("parallel", "parallel", "parallel"),
            vmem_limit_bytes=32 * 1024 * 1024,
        ),
    )(x, *consts)


# ----------------------------------------------------------------------------
# Pure-JAX reference (straightforward translation of the PyTorch pipeline) for
# the correctness check in __main__.
# ----------------------------------------------------------------------------
def _diff_round(v):
    return jnp.round(v) + (v - jnp.round(v)) ** 3


def _diff_jpeg_reference(x, quality):
    factor = quality_to_factor(quality)
    nb, _, hp, wp = x.shape
    a = jnp.asarray(_A8, dtype=jnp.float32)
    hi = jax.lax.Precision.HIGHEST
    img = x.astype(jnp.float32) * 255.0
    r, g, b = img[:, 0], img[:, 1], img[:, 2]
    y = 0.299 * r + 0.587 * g + 0.114 * b
    cb = -0.168736 * r - 0.331264 * g + 0.5 * b + 128.0
    cr = 0.5 * r - 0.418688 * g - 0.081312 * b + 128.0

    def pool(p):
        return p.reshape(nb, hp // 2, 2, wp // 2, 2).mean(axis=(2, 4))

    def block_pipeline(plane, table):
        n, h, w = plane.shape
        blk = plane.reshape(n, h // 8, 8, w // 8, 8).transpose(0, 1, 3, 2, 4) - 128.0
        coef = jnp.einsum('ux,bijxy,vy->bijuv', a, blk, a, precision=hi)
        qt = jnp.asarray(table * factor, dtype=jnp.float32)
        dq = _diff_round(coef / qt) * qt
        rec = jnp.einsum('ux,bijuv,vy->bijxy', a, dq, a, precision=hi) + 128.0
        return rec.transpose(0, 1, 3, 2, 4).reshape(n, h, w)

    y_r = block_pipeline(y, _Y_TABLE)
    cb_r = block_pipeline(pool(cb), _C_TABLE)
    cr_r = block_pipeline(pool(cr), _C_TABLE)

    def up(p):
        return jnp.repeat(jnp.repeat(p, 2, axis=1), 2, axis=2)

    cb_u = up(cb_r) - 128.0
    cr_u = up(cr_r) - 128.0
    r_o = y_r + 1.402 * cr_u
    g_o = y_r - 0.344136 * cb_u - 0.714136 * cr_u
    b_o = y_r + 1.772 * cb_u
    rgb = jnp.stack([r_o, g_o, b_o], axis=1)
    return jnp.clip(rgb, 0.0, 255.0) / 255.0


if __name__ == "__main__":
    key = jax.random.PRNGKey(0)
    batch, chans, height, width = 2, 3, 16, 16
    x = jax.random.uniform(key, (batch, chans, height, width), dtype=jnp.float32)

    out = jax.block_until_ready(diff_jpeg(x, quality=80))
    assert out.shape == x.shape and out.dtype == jnp.float32
    assert bool(jnp.all(jnp.isfinite(out)))
    assert bool(jnp.all(out >= 0.0)) and bool(jnp.all(out <= 1.0))

    # A constant mid-gray image survives the JPEG round trip almost exactly
    # (DC-only blocks, no rounding-boundary ambiguity).
    x_const = jnp.full((1, 3, 32, 32), 0.5, dtype=jnp.float32)
    out_const = jax.block_until_ready(diff_jpeg(x_const, quality=80))
    assert bool(jnp.max(jnp.abs(out_const - 0.5)) < 0.02)

    # Compare against the straightforward pure-JAX reference.  Median abs error
    # is robust to the rare case where diff_round sits on a rounding boundary
    # and f32 reassociation flips the nearest integer for one block.
    ref = _diff_jpeg_reference(x, quality=80)
    median_err = float(jnp.median(jnp.abs(out - ref)))
    assert median_err < 1e-3, median_err

    print("KERNEL_OK")
</pallas_src>

<mosaic_0001>
module attributes {stable_mosaic.version = 11 : i64} {
  func.func @_diff_jpeg_kernel(%arg0: i32, %arg1: i32, %arg2: i32, %arg3: memref<1x3x16x16xf32, #tpu.memory_space<vmem>>, %arg4: memref<16x16xf32, #tpu.memory_space<vmem>>, %arg5: memref<16x16xf32, #tpu.memory_space<vmem>>, %arg6: memref<16x16xf32, #tpu.memory_space<vmem>>, %arg7: memref<16x16xf32, #tpu.memory_space<vmem>>, %arg8: memref<8x16xf32, #tpu.memory_space<vmem>>, %arg9: memref<16x8xf32, #tpu.memory_space<vmem>>, %arg10: memref<16x8xf32, #tpu.memory_space<vmem>>, %arg11: memref<8x16xf32, #tpu.memory_space<vmem>>, %arg12: memref<16x16xf32, #tpu.memory_space<vmem>>, %arg13: memref<16x16xf32, #tpu.memory_space<vmem>>, %arg14: memref<8x8xf32, #tpu.memory_space<vmem>>, %arg15: memref<8x8xf32, #tpu.memory_space<vmem>>, %arg16: memref<1x3x16x16xf32, #tpu.memory_space<vmem>>) attributes {dimension_semantics = [#tpu.dimension_semantics<parallel>, #tpu.dimension_semantics<parallel>, #tpu.dimension_semantics<parallel>], iteration_bounds = array<i64: 2, 1, 1>, scalar_prefetch = 0 : i64, scratch_operands = 0 : i64, tpu.core_type = #tpu.core_type<tc>, window_params = [{transform_indices = @transform_0, window_bounds = array<i64: 1, 3, 16, 16>}, {pipeline_mode = #tpu.pipeline_mode<synchronous>, transform_indices = @transform_1, window_bounds = array<i64: 16, 16>}, {pipeline_mode = #tpu.pipeline_mode<synchronous>, transform_indices = @transform_2, window_bounds = array<i64: 16, 16>}, {pipeline_mode = #tpu.pipeline_mode<synchronous>, transform_indices = @transform_3, window_bounds = array<i64: 16, 16>}, {pipeline_mode = #tpu.pipeline_mode<synchronous>, transform_indices = @transform_4, window_bounds = array<i64: 16, 16>}, {pipeline_mode = #tpu.pipeline_mode<synchronous>, transform_indices = @transform_5, window_bounds = array<i64: 8, 16>}, {pipeline_mode = #tpu.pipeline_mode<synchronous>, transform_indices = @transform_6, window_bounds = array<i64: 16, 8>}, {pipeline_mode = #tpu.pipeline_mode<synchronous>, transform_indices = @transform_7, window_bounds = array<i64: 16, 8>}, {pipeline_mode = #tpu.pipeline_mode<synchronous>, transform_indices = @transform_8, window_bounds = array<i64: 8, 16>}, {pipeline_mode = #tpu.pipeline_mode<synchronous>, transform_indices = @transform_9, window_bounds = array<i64: 16, 16>}, {pipeline_mode = #tpu.pipeline_mode<synchronous>, transform_indices = @transform_10, window_bounds = array<i64: 16, 16>}, {pipeline_mode = #tpu.pipeline_mode<synchronous>, transform_indices = @transform_11, window_bounds = array<i64: 8, 8>}, {pipeline_mode = #tpu.pipeline_mode<synchronous>, transform_indices = @transform_12, window_bounds = array<i64: 8, 8>}, {transform_indices = @transform_13, window_bounds = array<i64: 1, 3, 16, 16>}]} {
    %c0 = arith.constant 0 : index
    %c0_0 = arith.constant 0 : index
    %c0_1 = arith.constant 0 : index
    %c0_2 = arith.constant 0 : index
    %0 = vector.load %arg3[%c0, %c0_0, %c0_1, %c0_2] : memref<1x3x16x16xf32, #tpu.memory_space<vmem>>, vector<1x1x16x16xf32>
    %1 = vector.shape_cast %0 : vector<1x1x16x16xf32> to vector<16x16xf32>
    %cst = arith.constant 2.550000e+02 : f32
    %2 = vector.broadcast %cst : f32 to vector<16x16xf32>
    %3 = arith.mulf %1, %2 : vector<16x16xf32>
    %c0_3 = arith.constant 0 : index
    %c1 = arith.constant 1 : index
    %c0_4 = arith.constant 0 : index
    %c0_5 = arith.constant 0 : index
    %4 = vector.load %arg3[%c0_3, %c1, %c0_4, %c0_5] : memref<1x3x16x16xf32, #tpu.memory_space<vmem>>, vector<1x1x16x16xf32>
    %5 = vector.shape_cast %4 : vector<1x1x16x16xf32> to vector<16x16xf32>
    %cst_6 = arith.constant 2.550000e+02 : f32
    %6 = vector.broadcast %cst_6 : f32 to vector<16x16xf32>
    %7 = arith.mulf %5, %6 : vector<16x16xf32>
    %c0_7 = arith.constant 0 : index
    %c2 = arith.constant 2 : index
    %c0_8 = arith.constant 0 : index
    %c0_9 = arith.constant 0 : index
    %8 = vector.load %arg3[%c0_7, %c2, %c0_8, %c0_9] : memref<1x3x16x16xf32, #tpu.memory_space<vmem>>, vector<1x1x16x16xf32>
    %9 = vector.shape_cast %8 : vector<1x1x16x16xf32> to vector<16x16xf32>
    %cst_10 = arith.constant 2.550000e+02 : f32
    %10 = vector.broadcast %cst_10 : f32 to vector<16x16xf32>
    %11 = arith.mulf %9, %10 : vector<16x16xf32>
    %cst_11 = arith.constant 2.990000e-01 : f32
    %12 = vector.broadcast %cst_11 : f32 to vector<16x16xf32>
    %13 = arith.mulf %12, %3 : vector<16x16xf32>
    %cst_12 = arith.constant 5.870000e-01 : f32
    %14 = vector.broadcast %cst_12 : f32 to vector<16x16xf32>
    %15 = arith.mulf %14, %7 : vector<16x16xf32>
    %16 = arith.addf %13, %15 : vector<16x16xf32>
    %cst_13 = arith.constant 1.140000e-01 : f32
    %17 = vector.broadcast %cst_13 : f32 to vector<16x16xf32>
    %18 = arith.mulf %17, %11 : vector<16x16xf32>
    %19 = arith.addf %16, %18 : vector<16x16xf32>
    %cst_14 = arith.constant 1.280000e+02 : f32
    %20 = vector.broadcast %cst_14 : f32 to vector<16x16xf32>
    %21 = arith.subf %19, %20 : vector<16x16xf32>
    %cst_15 = arith.constant -1.687360e-01 : f32
    %22 = vector.broadcast %cst_15 : f32 to vector<16x16xf32>
    %23 = arith.mulf %22, %3 : vector<16x16xf32>
    %cst_16 = arith.constant 3.312640e-01 : f32
    %24 = vector.broadcast %cst_16 : f32 to vector<16x16xf32>
    %25 = arith.mulf %24, %7 : vector<16x16xf32>
    %26 = arith.subf %23, %25 : vector<16x16xf32>
    %cst_17 = arith.constant 5.000000e-01 : f32
    %27 = vector.broadcast %cst_17 : f32 to vector<16x16xf32>
    %28 = arith.mulf %27, %11 : vector<16x16xf32>
    %29 = arith.addf %26, %28 : vector<16x16xf32>
    %cst_18 = arith.constant 5.000000e-01 : f32
    %30 = vector.broadcast %cst_18 : f32 to vector<16x16xf32>
    %31 = arith.mulf %30, %3 : vector<16x16xf32>
    %cst_19 = arith.constant 4.186880e-01 : f32
    %32 = vector.broadcast %cst_19 : f32 to vector<16x16xf32>
    %33 = arith.mulf %32, %7 : vector<16x16xf32>
    %34 = arith.subf %31, %33 : vector<16x16xf32>
    %cst_20 = arith.constant 8.131200e-02 : f32
    %35 = vector.broadcast %cst_20 : f32 to vector<16x16xf32>
    %36 = arith.mulf %35, %11 : vector<16x16xf32>
    %37 = arith.subf %34, %36 : vector<16x16xf32>
    %c0_21 = arith.constant 0 : index
    %c0_22 = arith.constant 0 : index
    %38 = vector.load %arg4[%c0_21, %c0_22] : memref<16x16xf32, #tpu.memory_space<vmem>>, vector<16x16xf32>
    %cst_23 = arith.constant dense<0.000000e+00> : vector<16x16xf32>
    %39 = tpu.matmul %38, %21, %cst_23 {dimension_numbers = #tpu.dot_dimension_numbers<[1], [0], [0], [1], [0, 0, 1, 1], [], []>} : vector<16x16xf32>, vector<16x16xf32>, vector<16x16xf32> -> vector<16x16xf32>
    %c0_24 = arith.constant 0 : index
    %c0_25 = arith.constant 0 : index
    %40 = vector.load %arg5[%c0_24, %c0_25] : memref<16x16xf32, #tpu.memory_space<vmem>>, vector<16x16xf32>
    %cst_26 = arith.constant dense<0.000000e+00> : vector<16x16xf32>
    %41 = tpu.matmul %39, %40, %cst_26 {dimension_numbers = #tpu.dot_dimension_numbers<[1], [0], [0], [1], [0, 0, 1, 1], [], []>} : vector<16x16xf32>, vector<16x16xf32>, vector<16x16xf32> -> vector<16x16xf32>
    %c0_27 = arith.constant 0 : index
    %c0_28 = arith.constant 0 : index
    %42 = vector.load %arg12[%c0_27, %c0_28] : memref<16x16xf32, #tpu.memory_space<vmem>>, vector<16x16xf32>
    %c0_29 = arith.constant 0 : index
    %c0_30 = arith.constant 0 : index
    %43 = vector.load %arg13[%c0_29, %c0_30] : memref<16x16xf32, #tpu.memory_space<vmem>>, vector<16x16xf32>
    %44 = arith.mulf %41, %43 : vector<16x16xf32>
    %45 = math.roundeven %44 : vector<16x16xf32>
    %46 = arith.subf %44, %45 : vector<16x16xf32>
    %47 = arith.mulf %46, %46 : vector<16x16xf32>
    %48 = arith.mulf %46, %47 : vector<16x16xf32>
    %49 = arith.addf %45, %48 : vector<16x16xf32>
    %50 = arith.mulf %49, %42 : vector<16x16xf32>
    %c0_31 = arith.constant 0 : index
    %c0_32 = arith.constant 0 : index
    %51 = vector.load %arg6[%c0_31, %c0_32] : memref<16x16xf32, #tpu.memory_space<vmem>>, vector<16x16xf32>
    %cst_33 = arith.constant dense<0.000000e+00> : vector<16x16xf32>
    %52 = tpu.matmul %51, %50, %cst_33 {dimension_numbers = #tpu.dot_dimension_numbers<[1], [0], [0], [1], [0, 0, 1, 1], [], []>} : vector<16x16xf32>, vector<16x16xf32>, vector<16x16xf32> -> vector<16x16xf32>
    %c0_34 = arith.constant 0 : index
    %c0_35 = arith.constant 0 : index
    %53 = vector.load %arg7[%c0_34, %c0_35] : memref<16x16xf32, #tpu.memory_space<vmem>>, vector<16x16xf32>
    %cst_36 = arith.constant dense<0.000000e+00> : vector<16x16xf32>
    %54 = tpu.matmul %52, %53, %cst_36 {dimension_numbers = #tpu.dot_dimension_numbers<[1], [0], [0], [1], [0, 0, 1, 1], [], []>} : vector<16x16xf32>, vector<16x16xf32>, vector<16x16xf32> -> vector<16x16xf32>
    %cst_37 = arith.constant 1.280000e+02 : f32
    %55 = vector.broadcast %cst_37 : f32 to vector<16x16xf32>
    %56 = arith.addf %54, %55 : vector<16x16xf32>
    %c0_38 = arith.constant 0 : index
    %c0_39 = arith.constant 0 : index
    %57 = vector.load %arg8[%c0_38, %c0_39] : memref<8x16xf32, #tpu.memory_space<vmem>>, vector<8x16xf32>
    %cst_40 = arith.constant dense<0.000000e+00> : vector<8x16xf32>
    %58 = tpu.matmul %57, %29, %cst_40 {dimension_numbers = #tpu.dot_dimension_numbers<[1], [0], [0], [1], [0, 0, 1, 1], [], []>} : vector<8x16xf32>, vector<16x16xf32>, vector<8x16xf32> -> vector<8x16xf32>
    %c0_41 = arith.constant 0 : index
    %c0_42 = arith.constant 0 : index
    %59 = vector.load %arg9[%c0_41, %c0_42] : memref<16x8xf32, #tpu.memory_space<vmem>>, vector<16x8xf32>
    %cst_43 = arith.constant dense<0.000000e+00> : vector<8x8xf32>
    %60 = tpu.matmul %58, %59, %cst_43 {dimension_numbers = #tpu.dot_dimension_numbers<[1], [0], [0], [1], [0, 0, 1, 1], [], []>} : vector<8x16xf32>, vector<16x8xf32>, vector<8x8xf32> -> vector<8x8xf32>
    %c0_44 = arith.constant 0 : index
    %c0_45 = arith.constant 0 : index
    %61 = vector.load %arg14[%c0_44, %c0_45] : memref<8x8xf32, #tpu.memory_space<vmem>>, vector<8x8xf32>
    %c0_46 = arith.constant 0 : index
    %c0_47 = arith.constant 0 : index
    %62 = vector.load %arg15[%c0_46, %c0_47] : memref<8x8xf32, #tpu.memory_space<vmem>>, vector<8x8xf32>
    %63 = arith.mulf %60, %62 : vector<8x8xf32>
    %64 = math.roundeven %63 : vector<8x8xf32>
    %65 = arith.subf %63, %64 : vector<8x8xf32>
    %66 = arith.mulf %65, %65 : vector<8x8xf32>
    %67 = arith.mulf %65, %66 : vector<8x8xf32>
    %68 = arith.addf %64, %67 : vector<8x8xf32>
    %69 = arith.mulf %68, %61 : vector<8x8xf32>
    %c0_48 = arith.constant 0 : index
    %c0_49 = arith.constant 0 : index
    %70 = vector.load %arg10[%c0_48, %c0_49] : memref<16x8xf32, #tpu.memory_space<vmem>>, vector<16x8xf32>
    %cst_50 = arith.constant dense<0.000000e+00> : vector<16x8xf32>
    %71 = tpu.matmul %70, %69, %cst_50 {dimension_numbers = #tpu.dot_dimension_numbers<[1], [0], [0], [1], [0, 0, 1, 1], [], []>} : vector<16x8xf32>, vector<8x8xf32>, vector<16x8xf32> -> vector<16x8xf32>
    %c0_51 = arith.constant 0 : index
    %c0_52 = arith.constant 0 : index
    %72 = vector.load %arg11[%c0_51, %c0_52] : memref<8x16xf32, #tpu.memory_space<vmem>>, vector<8x16xf32>
    %cst_53 = arith.constant dense<0.000000e+00> : vector<16x16xf32>
    %73 = tpu.matmul %71, %72, %cst_53 {dimension_numbers = #tpu.dot_dimension_numbers<[1], [0], [0], [1], [0, 0, 1, 1], [], []>} : vector<16x8xf32>, vector<8x16xf32>, vector<16x16xf32> -> vector<16x16xf32>
    %c0_54 = arith.constant 0 : index
    %c0_55 = arith.constant 0 : index
    %74 = vector.load %arg8[%c0_54, %c0_55] : memref<8x16xf32, #tpu.memory_space<vmem>>, vector<8x16xf32>
    %cst_56 = arith.constant dense<0.000000e+00> : vector<8x16xf32>
    %75 = tpu.matmul %74, %37, %cst_56 {dimension_numbers = #tpu.dot_dimension_numbers<[1], [0], [0], [1], [0, 0, 1, 1], [], []>} : vector<8x16xf32>, vector<16x16xf32>, vector<8x16xf32> -> vector<8x16xf32>
    %c0_57 = arith.constant 0 : index
    %c0_58 = arith.constant 0 : index
    %76 = vector.load %arg9[%c0_57, %c0_58] : memref<16x8xf32, #tpu.memory_space<vmem>>, vector<16x8xf32>
    %cst_59 = arith.constant dense<0.000000e+00> : vector<8x8xf32>
    %77 = tpu.matmul %75, %76, %cst_59 {dimension_numbers = #tpu.dot_dimension_numbers<[1], [0], [0], [1], [0, 0, 1, 1], [], []>} : vector<8x16xf32>, vector<16x8xf32>, vector<8x8xf32> -> vector<8x8xf32>
    %c0_60 = arith.constant 0 : index
    %c0_61 = arith.constant 0 : index
    %78 = vector.load %arg14[%c0_60, %c0_61] : memref<8x8xf32, #tpu.memory_space<vmem>>, vector<8x8xf32>
    %c0_62 = arith.constant 0 : index
    %c0_63 = arith.constant 0 : index
    %79 = vector.load %arg15[%c0_62, %c0_63] : memref<8x8xf32, #tpu.memory_space<vmem>>, vector<8x8xf32>
    %80 = arith.mulf %77, %79 : vector<8x8xf32>
    %81 = math.roundeven %80 : vector<8x8xf32>
    %82 = arith.subf %80, %81 : vector<8x8xf32>
    %83 = arith.mulf %82, %82 : vector<8x8xf32>
    %84 = arith.mulf %82, %83 : vector<8x8xf32>
    %85 = arith.addf %81, %84 : vector<8x8xf32>
    %86 = arith.mulf %85, %78 : vector<8x8xf32>
    %c0_64 = arith.constant 0 : index
    %c0_65 = arith.constant 0 : index
    %87 = vector.load %arg10[%c0_64, %c0_65] : memref<16x8xf32, #tpu.memory_space<vmem>>, vector<16x8xf32>
    %cst_66 = arith.constant dense<0.000000e+00> : vector<16x8xf32>
    %88 = tpu.matmul %87, %86, %cst_66 {dimension_numbers = #tpu.dot_dimension_numbers<[1], [0], [0], [1], [0, 0, 1, 1], [], []>} : vector<16x8xf32>, vector<8x8xf32>, vector<16x8xf32> -> vector<16x8xf32>
    %c0_67 = arith.constant 0 : index
    %c0_68 = arith.constant 0 : index
    %89 = vector.load %arg11[%c0_67, %c0_68] : memref<8x16xf32, #tpu.memory_space<vmem>>, vector<8x16xf32>
    %cst_69 = arith.constant dense<0.000000e+00> : vector<16x16xf32>
    %90 = tpu.matmul %88, %89, %cst_69 {dimension_numbers = #tpu.dot_dimension_numbers<[1], [0], [0], [1], [0, 0, 1, 1], [], []>} : vector<16x8xf32>, vector<8x16xf32>, vector<16x16xf32> -> vector<16x16xf32>
    %cst_70 = arith.constant 1.402000e+00 : f32
    %91 = vector.broadcast %cst_70 : f32 to vector<16x16xf32>
    %92 = arith.mulf %91, %90 : vector<16x16xf32>
    %93 = arith.addf %56, %92 : vector<16x16xf32>
    %cst_71 = arith.constant 3.441360e-01 : f32
    %94 = vector.broadcast %cst_71 : f32 to vector<16x16xf32>
    %95 = arith.mulf %94, %73 : vector<16x16xf32>
    %96 = arith.subf %56, %95 : vector<16x16xf32>
    %cst_72 = arith.constant 7.141360e-01 : f32
    %97 = vector.broadcast %cst_72 : f32 to vector<16x16xf32>
    %98 = arith.mulf %97, %90 : vector<16x16xf32>
    %99 = arith.subf %96, %98 : vector<16x16xf32>
    %cst_73 = arith.constant 1.772000e+00 : f32
    %100 = vector.broadcast %cst_73 : f32 to vector<16x16xf32>
    %101 = arith.mulf %100, %73 : vector<16x16xf32>
    %102 = arith.addf %56, %101 : vector<16x16xf32>
    %cst_74 = arith.constant 0.000000e+00 : f32
    %cst_75 = arith.constant 2.550000e+02 : f32
    %103 = vector.broadcast %cst_74 : f32 to vector<16x16xf32>
    %104 = arith.maximumf %103, %93 : vector<16x16xf32>
    %105 = vector.broadcast %cst_75 : f32 to vector<16x16xf32>
    %106 = arith.minimumf %105, %104 : vector<16x16xf32>
    %cst_76 = arith.constant 0.00392156886 : f32
    %107 = vector.broadcast %cst_76 : f32 to vector<16x16xf32>
    %108 = arith.mulf %106, %107 : vector<16x16xf32>
    %c0_77 = arith.constant 0 : index
    %c0_78 = arith.constant 0 : index
    %c0_79 = arith.constant 0 : index
    %c0_80 = arith.constant 0 : index
    %109 = vector.load %arg16[%c0_77, %c0_78, %c0_79, %c0_80] : memref<1x3x16x16xf32, #tpu.memory_space<vmem>>, vector<1x1x16x16xf32>
    %110 = vector.shape_cast %109 : vector<1x1x16x16xf32> to vector<16x16xf32>
    %111 = vector.shape_cast %108 : vector<16x16xf32> to vector<1x1x16x16xf32>
    tpu.vector_store %arg16[%c0_77, %c0_78, %c0_79, %c0_80], %111 {strides = array<i32>} : memref<1x3x16x16xf32, #tpu.memory_space<vmem>>, vector<1x1x16x16xf32>,
    %cst_81 = arith.constant 0.000000e+00 : f32
    %cst_82 = arith.constant 2.550000e+02 : f32
    %112 = vector.broadcast %cst_81 : f32 to vector<16x16xf32>
    %113 = arith.maximumf %112, %99 : vector<16x16xf32>
    %114 = vector.broadcast %cst_82 : f32 to vector<16x16xf32>
    %115 = arith.minimumf %114, %113 : vector<16x16xf32>
    %cst_83 = arith.constant 0.00392156886 : f32
    %116 = vector.broadcast %cst_83 : f32 to vector<16x16xf32>
    %117 = arith.mulf %115, %116 : vector<16x16xf32>
    %c0_84 = arith.constant 0 : index
    %c1_85 = arith.constant 1 : index
    %c0_86 = arith.constant 0 : index
    %c0_87 = arith.constant 0 : index
    %118 = vector.load %arg16[%c0_84, %c1_85, %c0_86, %c0_87] : memref<1x3x16x16xf32, #tpu.memory_space<vmem>>, vector<1x1x16x16xf32>
    %119 = vector.shape_cast %118 : vector<1x1x16x16xf32> to vector<16x16xf32>
    %120 = vector.shape_cast %117 : vector<16x16xf32> to vector<1x1x16x16xf32>
    tpu.vector_store %arg16[%c0_84, %c1_85, %c0_86, %c0_87], %120 {strides = array<i32>} : memref<1x3x16x16xf32, #tpu.memory_space<vmem>>, vector<1x1x16x16xf32>,
    %cst_88 = arith.constant 0.000000e+00 : f32
    %cst_89 = arith.constant 2.550000e+02 : f32
    %121 = vector.broadcast %cst_88 : f32 to vector<16x16xf32>
    %122 = arith.maximumf %121, %102 : vector<16x16xf32>
    %123 = vector.broadcast %cst_89 : f32 to vector<16x16xf32>
    %124 = arith.minimumf %123, %122 : vector<16x16xf32>
    %cst_90 = arith.constant 0.00392156886 : f32
    %125 = vector.broadcast %cst_90 : f32 to vector<16x16xf32>
    %126 = arith.mulf %124, %125 : vector<16x16xf32>
    %c0_91 = arith.constant 0 : index
    %c2_92 = arith.constant 2 : index
    %c0_93 = arith.constant 0 : index
    %c0_94 = arith.constant 0 : index
    %127 = vector.load %arg16[%c0_91, %c2_92, %c0_93, %c0_94] : memref<1x3x16x16xf32, #tpu.memory_space<vmem>>, vector<1x1x16x16xf32>
    %128 = vector.shape_cast %127 : vector<1x1x16x16xf32> to vector<16x16xf32>
    %129 = vector.shape_cast %126 : vector<16x16xf32> to vector<1x1x16x16xf32>
    tpu.vector_store %arg16[%c0_91, %c2_92, %c0_93, %c0_94], %129 {strides = array<i32>} : memref<1x3x16x16xf32, #tpu.memory_space<vmem>>, vector<1x1x16x16xf32>,
    return
  }
  func.func @transform_0(%arg0: i32, %arg1: i32, %arg2: i32) -> (i32, i32, i32, i32) {
    %c0_i32 = arith.constant 0 : i32
    %c0_i32_0 = arith.constant 0 : i32
    return %arg0, %c0_i32, %arg1, %arg2 : i32, i32, i32, i32
  }
  func.func @transform_1(%arg0: i32, %arg1: i32, %arg2: i32) -> (i32, i32) {
    %c0_i32 = arith.constant 0 : i32
    %c0_i32_0 = arith.constant 0 : i32
    %c0_i32_1 = arith.constant 0 : i32
    return %c0_i32, %c0_i32_0 : i32, i32
  }
  func.func @transform_2(%arg0: i32, %arg1: i32, %arg2: i32) -> (i32, i32) {
    %c0_i32 = arith.constant 0 : i32
    %c0_i32_0 = arith.constant 0 : i32
    %c0_i32_1 = arith.constant 0 : i32
    return %c0_i32, %c0_i32_0 : i32, i32
  }
  func.func @transform_3(%arg0: i32, %arg1: i32, %arg2: i32) -> (i32, i32) {
    %c0_i32 = arith.constant 0 : i32
    %c0_i32_0 = arith.constant 0 : i32
    %c0_i32_1 = arith.constant 0 : i32
    return %c0_i32, %c0_i32_0 : i32, i32
  }
  func.func @transform_4(%arg0: i32, %arg1: i32, %arg2: i32) -> (i32, i32) {
    %c0_i32 = arith.constant 0 : i32
    %c0_i32_0 = arith.constant 0 : i32
    %c0_i32_1 = arith.constant 0 : i32
    return %c0_i32, %c0_i32_0 : i32, i32
  }
  func.func @transform_5(%arg0: i32, %arg1: i32, %arg2: i32) -> (i32, i32) {
    %c0_i32 = arith.constant 0 : i32
    %c0_i32_0 = arith.constant 0 : i32
    %c0_i32_1 = arith.constant 0 : i32
    return %c0_i32, %c0_i32_0 : i32, i32
  }
  func.func @transform_6(%arg0: i32, %arg1: i32, %arg2: i32) -> (i32, i32) {
    %c0_i32 = arith.constant 0 : i32
    %c0_i32_0 = arith.constant 0 : i32
    %c0_i32_1 = arith.constant 0 : i32
    return %c0_i32, %c0_i32_0 : i32, i32
  }
  func.func @transform_7(%arg0: i32, %arg1: i32, %arg2: i32) -> (i32, i32) {
    %c0_i32 = arith.constant 0 : i32
    %c0_i32_0 = arith.constant 0 : i32
    %c0_i32_1 = arith.constant 0 : i32
    return %c0_i32, %c0_i32_0 : i32, i32
  }
  func.func @transform_8(%arg0: i32, %arg1: i32, %arg2: i32) -> (i32, i32) {
    %c0_i32 = arith.constant 0 : i32
    %c0_i32_0 = arith.constant 0 : i32
    %c0_i32_1 = arith.constant 0 : i32
    return %c0_i32, %c0_i32_0 : i32, i32
  }
  func.func @transform_9(%arg0: i32, %arg1: i32, %arg2: i32) -> (i32, i32) {
    %c0_i32 = arith.constant 0 : i32
    %c0_i32_0 = arith.constant 0 : i32
    %c0_i32_1 = arith.constant 0 : i32
    return %c0_i32, %c0_i32_0 : i32, i32
  }
  func.func @transform_10(%arg0: i32, %arg1: i32, %arg2: i32) -> (i32, i32) {
    %c0_i32 = arith.constant 0 : i32
    %c0_i32_0 = arith.constant 0 : i32
    %c0_i32_1 = arith.constant 0 : i32
    return %c0_i32, %c0_i32_0 : i32, i32
  }
  func.func @transform_11(%arg0: i32, %arg1: i32, %arg2: i32) -> (i32, i32) {
    %c0_i32 = arith.constant 0 : i32
    %c0_i32_0 = arith.constant 0 : i32
    %c0_i32_1 = arith.constant 0 : i32
    return %c0_i32, %c0_i32_0 : i32, i32
  }
  func.func @transform_12(%arg0: i32, %arg1: i32, %arg2: i32) -> (i32, i32) {
    %c0_i32 = arith.constant 0 : i32
    %c0_i32_0 = arith.constant 0 : i32
    %c0_i32_1 = arith.constant 0 : i32
    return %c0_i32, %c0_i32_0 : i32, i32
  }
  func.func @transform_13(%arg0: i32, %arg1: i32, %arg2: i32) -> (i32, i32, i32, i32) {
    %c0_i32 = arith.constant 0 : i32
    %c0_i32_0 = arith.constant 0 : i32
    return %arg0, %c0_i32, %arg1, %arg2 : i32, i32, i32, i32
  }
}

</mosaic_0001>

<bundles_post_ra>
// kernel: tpu_custom_call.1
= control target key start
LH: loop header
LB: loop body
LE: loop exit
PB: predicated region body
PF: predicated region fallthrough
CT: control target
= control target key end

     0   :  { %s2809_s0 = inlined_call_operand.hbm [shape: f32[2,3,16,16], index: 0, kind: input, shape index: {}]   ;;  %s2810_s1 = inlined_call_operand.vmem [shape: f32[16,16], index: 1, kind: input, shape index: {}]   ;;  %s2811_s2 = inlined_call_operand.vmem [shape: f32[16,16], index: 2, kind: input, shape index: {}]   ;;  %s2812_s3 = inlined_call_operand.vmem [shape: f32[16,16], index: 3, kind: input, shape index: {}]   ;;  %s2813_s4 = inlined_call_operand.hbm [shape: f32[16,16], index: 4, kind: input, shape index: {}]   ;;  %s2814_s5 = inlined_call_operand.hbm [shape: f32[8,16], index: 5, kind: input, shape index: {}]   ;;  %s2815_s6 = inlined_call_operand.vmem [shape: f32[16,8], index: 6, kind: input, shape index: {}]   ;;  %s2816_s7 = inlined_call_operand.vmem [shape: f32[16,8], index: 7, kind: input, shape index: {}]   ;;  %s2817_s8 = inlined_call_operand.hbm [shape: f32[8,16], index: 8, kind: input, shape index: {}]   ;;  %s2818_s9 = inlined_call_operand.vmem [shape: f32[16,16], index: 9, kind: input, shape index: {}]   ;;  %s2819_s10 = inlined_call_operand.vmem [shape: f32[16,16], index: 10, kind: input, shape index: {}]   ;;  %s2820_s11 = inlined_call_operand.vmem [shape: f32[8,8], index: 11, kind: input, shape index: {}]   ;;  %s2821_s12 = inlined_call_operand.hbm [shape: f32[8,8], index: 12, kind: input, shape index: {}]   ;;  %s2822_s13 = inlined_call_operand.hbm [shape: f32[2,3,16,16], index: 13, kind: output, shape index: {}]  }
   0x1   :  { %2835 = sst [smem:[#allocation19_spill]] %s2809_s0 }
   0x2   :  { %2836 = sst [smem:[#allocation20_spill]] %s2812_s3 }
   0x3   :  { %2837 = sst [smem:[#allocation21_spill]] %s2815_s6 }
   0x4   :  { %2838 = sst [smem:[#allocation22_spill]] %s2816_s7 }
   0x5   :  { %2839 = sst [smem:[#allocation23_spill]] %s2818_s9 }
   0x6   :  { %2840 = sst [smem:[#allocation24_spill]] %s2819_s10 }
   0x7   :  { %2841 = sst [smem:[#allocation25_spill]] %s2820_s11 }
   0x8   :  { %2842 = sst [smem:[#allocation26_spill]] %s2822_s13 }
   0x9   :  { %18 = vsyncpa [#allocation3], 0 }
   0xa   :  { %20 = vsyncpa [#allocation3 + $0x1], 0 }
   0xb   :  { %21 = vsyncpa [#allocation6], 0 }
   0xc   :  { %22 = vsyncpa [#allocation9], 0 }
   0xd   :  { %23 = vsyncpa [#allocation4], 0 }
   0xe   :  { %25 = vsyncpa [#allocation4 + $0x1], 0  ;;  %s2385_s25 = smov 0   ;;  %s2387_s26 = smov 0  }
   0xf   :  { %s2389_s27 = smov 0   ;;  %s2391_s28 = smov 0  }
  0x10   :  { %s2393_s29 = smov 0   ;;  %s2395_s30 = smov 0  }
  0x11 LB: > { %2843 = sst [smem:[#allocation16_spill]] %s2280_s25  ;;  %s1759_s14 = sadd.s32 4294967295, %s2300_s30   ;;  %s2300_s30 = sphi %s2395_s30, %s31_s30   ;;  %s2296_s29 = sphi %s2393_s29, %s2879_s29   ;;  %s2292_s28 = sphi %s2391_s28, %s2878_s28   ;;  %s2288_s27 = sphi %s2389_s27, %s2877_s27   ;;  %s2284_s26 = sphi %s2387_s26, %s2876_s26   ;;  %s2280_s25 = sphi %s2385_s25, %s2875_s25  }
  0x12   : > { %2844 = sst [smem:[#allocation17_spill]] %s2292_s28  ;;  %s1760_s15 = sadd.s32 4294967294, %s2300_s30  }
  0x13   : > { %p74_p0 = scmp.ne.s32.totalorder %s2284_s26, %s2280_s25  ;;  %p2419_p1 = scmp.eq.s32.totalorder %s1759_s14, 0 }
  0x14   : > { %p2423_p2 = scmp.eq.s32.totalorder %s1759_s14, 1  ;;  %p360_p3 = scmp.eq.s32.totalorder %s1760_s15, 1 }
  0x15   : > { %s2845_s16 = scalar_select %p2419_p1, 1, 0 }
  0x16   : > { %s2846_s17 = scalar_select %p2423_p2, 1, 0 }
  0x17   : > { %p2429_p4 = por %p2419_p1, %p74_p0  ;;  %p1761_p5 = scmp.ge.s32.totalorder %s2300_s30, 1 }
  0x18   : > { %p2434_p6 = por %p360_p3, %p74_p0  ;;  %p367_p7 = scmp.lt.s32.totalorder %s2300_s30, 3 }
  0x19   : > { %s2847_s18 = scalar_select %p2429_p4, 1, 0 }
  0x1a   : > { %s2848_s19 = scalar_select %p2434_p6, 1, 0 }
  0x1b   : > { %p2439_p8 = pnand %p1761_p5, %p367_p7  ;;  %s2302_s21 = smov [#allocation5]  }
  0x1c   : > { %2849 = sst [smem:[#allocation18_spill]] %s2848_s19  ;;  %s388_s22 = sshll.u32 %s2302_s21, 4  ;;  %s2443_s22 = int_to_ptr.vmem [resolvable:$true] %s388_s22 }
  0x1d   : > { %s2850_s20 = scalar_select %p2439_p8, 1, 0 }
  0x1e   : > { %p1978_p9 = pneg %p2439_p8  ;;  %s2303_s24 = smov [#allocation8]  }
  0x1f   : > { %s419_s14 = sshll.u32 %s2303_s24, 4  ;;  %s2304_s15 = smov [#allocation7]   ;;  %s2454_s14 = int_to_ptr.vmem [resolvable:$true] %s419_s14 }
  0x20   : > { %p2450_p11 = pnand %p1978_p9, %p2419_p1  ;;  %s2456_s19 = sshll.u32 %s2304_s15, 4  ;;  %s403_s19 = int_to_ptr.vmem [resolvable:$true] %s2456_s19 }
  0x21   : > { %s2068_s13 = scalar_lea.hbm %s2813_s4, 256 }
  0x22   : > { %p2069_p12 = scmp.ne.s32.totalorder %s2813_s4, %s2068_s13  ;;  %p2466_p13 = pneg %p2450_p11 }
  0x23   : > { %p2075_p5 = scmp.lt.u32.totalorder %s2068_s13, %s2813_s4 }
  0x24   : > { %p2071_p0 = pnand %p2466_p13, %p2069_p12 }
  0x26   : > { %p2072_p3 = pneg %p2071_p0 }
  0x28   : > { %p2077_p7 = pnand %p2075_p5, %p2072_p3 }
  0x2a   : > { %2080 = shalt.err (!%p2077_p7)
}
  0x2b   : > { %s2081_s11 = scalar_lea.vmem %s2443_s22, 256  ;;  %p2089_p1 = scmp.lt.s32.totalorder %s2443_s22, %s2443_s22 }
  0x2c   : > { %p2082_p9 = scmp.ne.s32.totalorder %s2443_s22, %s2081_s11  ;;  %p2090_p4 = scmp.lt.s32.totalorder %s2081_s11, %s2081_s11 }
  0x2e   : > { %p2084_p10 = pnand %p2082_p9, %p2466_p13  ;;  %p2091_p12 = por %p2090_p4, %p2089_p1 }
  0x30   : > { %p2085_p6 = pneg %p2084_p10 }
  0x32   : > { %p2092_p0 = pnand %p2091_p12, %p2085_p6 }
  0x34   : > { %2095 = shalt.err (!%p2092_p0)
}
  0x35   : > { %s2305_s25 = smov 128   ;;  %s2306_s13 = smov 8  }
  0x36   : > { %1981 = dma.hbm_to_vmem [thread:$0]  (!%p2450_p11), %s2813_s4, 256, %s2443_s22, [#allocation6], %s2305_s25, %s2305_s25, %s2306_s13  }
  0x37   : > { %s2096_s11 = scalar_lea.hbm %s2817_s8, 128 }
  0x38   : > { %p2097_p1 = scmp.ne.s32.totalorder %s2817_s8, %s2096_s11  ;;  %p2103_p10 = scmp.lt.u32.totalorder %s2096_s11, %s2817_s8 }
  0x3a   : > { %p2099_p4 = pnand %p2097_p1, %p2466_p13 }
  0x3c   : > { %p2100_p6 = pneg %p2099_p4 }
  0x3e   : > { %p2105_p3 = pnand %p2103_p10, %p2100_p6 }
  0x40   : > { %2108 = shalt.err (!%p2105_p3)
}
  0x41   : > { %s2109_s22 = scalar_lea.vmem %s2454_s14, 128  ;;  %p2117_p12 = scmp.lt.s32.totalorder %s2454_s14, %s2454_s14 }
  0x42   : > { %p2110_p5 = scmp.ne.s32.totalorder %s2454_s14, %s2109_s22  ;;  %p2118_p0 = scmp.lt.s32.totalorder %s2109_s22, %s2109_s22 }
  0x44   : > { %p2112_p7 = pnand %p2110_p5, %p2466_p13  ;;  %p2119_p1 = por %p2118_p0, %p2117_p12 }
  0x46   : > { %p2113_p9 = pneg %p2112_p7 }
  0x48   : > { %p2120_p4 = pnand %p2119_p1, %p2113_p9 }
  0x4a   : > { %2123 = shalt.err (!%p2120_p4)
}
  0x4b   : > { %1987 = dma.hbm_to_vmem [thread:$0]  (!%p2450_p11), %s2817_s8, 128, %s2454_s14, [#allocation9]  }
  0x4c   : > { %s2124_s28 = scalar_lea.hbm %s2814_s5, 128 }
  0x4d   : > { %p2125_p6 = scmp.ne.s32.totalorder %s2814_s5, %s2124_s28  ;;  %p2131_p5 = scmp.lt.u32.totalorder %s2124_s28, %s2814_s5 }
  0x4f   : > { %p2127_p10 = pnand %p2125_p6, %p2466_p13 }
  0x51   : > { %p2128_p3 = pneg %p2127_p10 }
  0x53   : > { %p2133_p7 = pnand %p2131_p5, %p2128_p3 }
  0x55   : > { %2136 = shalt.err (!%p2133_p7)
}
  0x56   : > { %s2137_s22 = scalar_lea.vmem %s403_s19, 128  ;;  %p2145_p1 = scmp.lt.s32.totalorder %s403_s19, %s403_s19 }
  0x57   : > { %p2138_p9 = scmp.ne.s32.totalorder %s403_s19, %s2137_s22  ;;  %p2146_p4 = scmp.lt.s32.totalorder %s2137_s22, %s2137_s22 }
  0x59   : > { %p2140_p12 = pnand %p2138_p9, %p2466_p13  ;;  %p2147_p8 = por %p2146_p4, %p2145_p1 }
  0x5b   : > { %p2141_p0 = pneg %p2140_p12 }
  0x5d   : > { %p2148_p2 = pnand %p2147_p8, %p2141_p0 }
  0x5f   : > { %2151 = shalt.err (!%p2148_p2)
}
  0x60   : > { %1984 = dma.hbm_to_vmem [thread:$0]  (!%p2450_p11), %s2814_s5, 128, %s403_s19, [#allocation6]  }
  0x61   : > { %s2307_s6 = smov [#allocation10]   ;;  %s2152_s21 = scalar_lea.hbm %s2821_s12, 128 }
  0x62   : > { %s439_s9 = sshll.u32 %s2307_s6, 4  ;;  %p2153_p6 = scmp.ne.s32.totalorder %s2821_s12, %s2152_s21  ;;  %s440_s9 = int_to_ptr.vmem [resolvable:$true] %s439_s9 }
  0x63   : > { %p2159_p10 = scmp.lt.u32.totalorder %s2152_s21, %s2821_s12 }
  0x64   : > { %p2155_p2 = pnand %p2153_p6, %p2466_p13 }
  0x66   : > { %p2156_p8 = pneg %p2155_p2 }
  0x68   : > { %p2161_p3 = pnand %p2159_p10, %p2156_p8 }
  0x6a   : > { %2164 = shalt.err (!%p2161_p3)
}
  0x6b   : > { %s2165_s19 = scalar_lea.vmem %s440_s9, 128  ;;  %p2173_p12 = scmp.lt.s32.totalorder %s440_s9, %s440_s9 }
  0x6c   : > { %p2166_p5 = scmp.ne.s32.totalorder %s440_s9, %s2165_s19  ;;  %p2174_p0 = scmp.lt.s32.totalorder %s2165_s19, %s2165_s19 }
  0x6e   : > { %p2168_p7 = pnand %p2166_p5, %p2466_p13  ;;  %p2175_p1 = por %p2174_p0, %p2173_p12 }
  0x70   : > { %p2169_p9 = pneg %p2168_p7 }
  0x72   : > { %p2176_p4 = pnand %p2175_p1, %p2169_p9 }
  0x74   : > { %2179 = shalt.err (!%p2176_p4)
}
  0x75   : > { %1990 = dma.hbm_to_vmem [thread:$0]  (!%p2450_p11), %s2821_s12, 128, %s440_s9, [#allocation9]  }
  0x76   : > { %s50_s7 = sadd.s32 1, %s2296_s29  ;;  %s61_s6 = sadd.s32 1, %s2288_s27 }
  0x77   : > { %p52_p13 = scmp.ge.s32.totalorder %s50_s7, 2  ;;  %p68_p6 = scmp.ne.s32.totalorder %s2288_s27, %s2284_s26 }
  0x78   : > { %p69_p2 = scmp.eq.s32.totalorder %s2300_s30, 0  ;;  %p2003_p8 = scmp.lt.s32.totalorder %s2300_s30, 2 }
  0x79   : > { %s2881_s7 = smov (%p52_p13, %s50_s7), 0  ;;  %p2853_p3 = scmp.ne.s32.totalorder %s2846_s17, 0 }
  0x7a   : > { %p70_p10 = por %p69_p2, %p68_p6  ;;  %s54_s10 = ssub.s32 %s2296_s29, %s2881_s7 }
  0x7b   : > { %p2560_p5 = por %p2853_p3, %p68_p6  ;;  %s450_s28 = sand.u32 1, %s2288_s27  }
  0x7c   : > { %p59_p7 = scmp.eq.s32.totalorder %s54_s10, 0  ;;  %s1950_s9 = smul.u32 48, %s450_s28 }
  0x7d   : > { %p2567_p11 = pnand %p2003_p8, %p70_p10  ;;  %s1951_s15 = smul.u32 768, %s2296_s29 }
  0x7e   : > { %s2572_s24 = scalar_select %p59_p7, %s2288_s27, %s61_s6  }
  0x7f   : > { %s454_s11 = scalar_lea.vmem [#allocation2], %s1950_s9  ;;  %s2856_s0 = sld [smem:[#allocation19_spill]] }
  0x80   : > { %s464_s22 = sshll.u32 %s454_s11, 4  ;;  %s2582_s3 = scalar_lea.sflag [#allocation3], %s450_s28  ;;  %s2580_s22 = int_to_ptr.vmem [resolvable:$true] %s464_s22 }
  0x81   : > { %p2182_p12 = pneg %p2567_p11 }
  0x85   : > { %s2578_s14 = scalar_lea.hbm %s2856_s0, %s1951_s15  ;;  %s2185_s15 = scalar_lea.hbm %s2856_s0, 1536 }
  0x86   : > { %s2180_s10 = scalar_lea.hbm %s2578_s14, 768  ;;  %p2186_p4 = scmp.lt.u32.totalorder %s2578_s14, %s2856_s0 }
  0x87   : > { %p2181_p9 = scmp.ne.s32.totalorder %s2578_s14, %s2180_s10  ;;  %p2187_p13 = scmp.lt.u32.totalorder %s2185_s15, %s2180_s10 }
  0x88   : > { %p2189_p2 = scmp.lt.u32.totalorder %s2180_s10, %s2578_s14 }
  0x89   : > { %p2183_p0 = pnand %p2182_p12, %p2181_p9  ;;  %p2188_p6 = por %p2187_p13, %p2186_p4 }
  0x8b   : > { %p2184_p1 = pneg %p2183_p0  ;;  %p2190_p8 = por %p2189_p2, %p2188_p6 }
  0x8d   : > { %p2191_p10 = pnand %p2190_p8, %p2184_p1 }
  0x8f   : > { %2194 = shalt.err (!%p2191_p10)
}
  0x90   : > { %s2195_s28 = scalar_lea.vmem %s2580_s22, 768  ;;  %s2308_s19 = smov [#allocation2]  }
  0x91   : > { %p2196_p3 = scmp.ne.s32.totalorder %s2580_s22, %s2195_s28  ;;  %s2200_s6 = sshll.u32 %s2308_s19, 4  ;;  %s2201_s6 = int_to_ptr.vmem [resolvable:$false] %s2200_s6 }
  0x92   : > { %s2202_s9 = scalar_lea.vmem %s2201_s6, 1536  ;;  %p2203_p0 = scmp.lt.s32.totalorder %s2580_s22, %s2201_s6 }
  0x93   : > { %p2198_p7 = pnand %p2196_p3, %p2182_p12  ;;  %p2204_p4 = scmp.lt.s32.totalorder %s2202_s9, %s2195_s28 }
  0x95   : > { %p2199_p9 = pneg %p2198_p7  ;;  %p2205_p13 = por %p2204_p4, %p2203_p0 }
  0x97   : > { %p2206_p6 = pnand %p2205_p13, %p2199_p9 }
  0x99   : > { %2209 = shalt.err (!%p2206_p6)
}
  0x9a   : > { %1994 = dma.hbm_to_vmem [thread:$0]  (!%p2567_p11), %s2578_s14, 768, %s2580_s22, %s2582_s3, %s2305_s25, %s2305_s25, %s2306_s13  }
  0x9b   : > { %p2857_p12 = scmp.ne.s32.totalorder %s2850_s20, 0 }
  0x9c   : > { %s2616_s10 = sand.u32 (!%p2857_p12), 1, %s2284_s26   ;;  %p2858_p1 = scmp.ne.s32.totalorder (!%p2857_p12), %s2847_s18, 0 }
  0x9d   : > { %476 = sbr.rel (%p2857_p12) target bundleno = 1980 (0x7bc), region = 72  ;;  %s479_s11 = scalar_lea.sflag (!%p2857_p12), [#allocation3], %s2616_s10 }
  0x9e   : > { %s1952_s15 = smul.u32 (!%p2857_p12), 48, %s2616_s10 }
  0xa0   : > { %s482_s21 = scalar_lea.vmem (!%p2857_p12), [#allocation2], %s1952_s15 }
  0xa4   : > { %2263 = dma.done.wait (%p2858_p1), %s479_s11, 768  }
  0xa5   : > { %2265 = vsyncadd (%p2858_p1), %s479_s11, 4294966528  ;;  %p2859_p11 = scmp.ne.s32.totalorder %s2845_s16, 0 }
  0xa7   : > { %2267 = dma.done.wait (%p2859_p11), [#allocation6], 384  }
  0xa8   : > { %2269 = vsyncadd (%p2859_p11), [#allocation6], 4294966912 }
  0xa9   : > { %2271 = dma.done.wait (%p2859_p11), [#allocation9], 256  }
  0xaa   : > { %2273 = vsyncadd (%p2859_p11), [#allocation9], 4294967040  ;;  %v543_v0 = vld [vmem:[%s482_s21] sm:$0xff]  ;;  %v544_v1 = vld [vmem:[%s482_s21 + $0x8] sm:$0xff]  ;;  %vm591_vm0 = vcmask 130048   ;;  %s2860_s19 = sld [smem:[#allocation20_spill]] }
  0xab   : > { %v1773_v2 = vld [vmem:[%s482_s21 + $0x10] sm:$0xff]  ;;  %v2634_v3 = vmul.f32 255.0, %v543_v0  ;;  %v2636_v4 = vmul.f32 255.0, %v544_v1  ;;  %v1774_v5 = vld [vmem:[%s482_s21 + $0x18] sm:$0xff]  ;;  %v1775_v7 = vld [vmem:[%s482_s21 + $0x20] sm:$0xff]  ;;  %v2309_v36 = vmov 0.0|0.0  }
  0xac   : > { %v2638_v6 = vmul.f32 255.0, %v1773_v2  ;;  %v1776_v8 = vld [vmem:[%s482_s21 + $0x28] sm:$0xff]  ;;  %v2640_v9 = vmul.f32 255.0, %v1774_v5  ;;  %v2642_v10 = vmul.f32 255.0, %v1775_v7  ;;  %v589_v12 = vld [vmem:[%s2810_s1] sm:$0xff]  ;;  %s2861_s11 = sld [smem:[#allocation24_spill]] }
  0xad   : > { %v2644_v11 = vmul.f32 255.0, %v1776_v8  ;;  %v673_v13 = vld [vmem:[%s2811_s2] sm:$0xff]  ;;  %v557_v14 = vmul.f32 0.299, %v2634_v3  ;;  %v558_v15 = vmul.f32 0.299, %v2636_v4  ;;  %1850 = vmatprep.mubr.msk.f32.mxu0 %vm591_vm0, %v589_v12 }
  0xae   : > { %v559_v16 = vmul.f32 0.587, %v2638_v6  ;;  %v560_v17 = vmul.f32 0.587, %v2640_v9  ;;  %v563_v18 = vmul.f32 0.114, %v2642_v10 }
  0xaf   : > { %v564_v19 = vmul.f32 0.114, %v2644_v11  ;;  %v674_v21 = vld [vmem:[%s2811_s2 + $0x8] sm:$0xff]  ;;  %v857_v33 = vld [vmem:[#allocation5] sm:$0xff]  ;;  %v569_v47 = vmul.f32 -0.168736, %v2634_v3 }
  0xb0   : > { %v561_v20 = vadd.f32 %v559_v16, %v557_v14  ;;  %v562_v22 = vadd.f32 %v560_v17, %v558_v15  ;;  %v1926_v23 = vpack.c.bf16 %v674_v21, %v673_v13  ;;  %v590_v29 = vld [vmem:[%s2810_s1 + $0x8] sm:$0xff]  ;;  %v774_v32 = vld [vmem:[%s2860_s19] sm:$0xff]  ;;  %v571_v48 = vmul.f32 0.331264, %v2638_v6  ;;  %s2862_s25 = sld [smem:[#allocation23_spill]]  ;;  %v940_v13 = vld [vmem:[#allocation7] sm:$0xff] }
  0xb1   : > { %v858_v34 = vld [vmem:[#allocation5 + $0x8] sm:$0xff]  ;;  %v570_v50 = vmul.f32 -0.168736, %v2636_v4  ;;  %v572_v51 = vmul.f32 0.331264, %v2640_v9  ;;  %v575_v60 = vmul.f32 0.5, %v2642_v10 }
  0xb2   : > { %v565_v24 = vadd.f32 %v563_v18, %v561_v20  ;;  %v566_v25 = vadd.f32 %v564_v19, %v562_v22  ;;  %1927 = vmatprep.subr.bf16.mxu1 %v1926_v23  ;;  %v1934_v35 = vpack.c.bf16 %v858_v34, %v857_v33  ;;  %v759_v37 = vld [vmem:[%s2861_s11 + $0x8] sm:$0xff]  ;;  %v758_v38 = vld [vmem:[%s2861_s11] sm:$0xff]  ;;  %v573_v56 = vsub.f32 %v569_v47, %v571_v48  ;;  %s2864_s9 = sld [smem:[#allocation21_spill]]  ;;  %s2867_s17 = sld [smem:[#allocation25_spill]] }
  0xb3   : > { %1929 = vmatpush3.bf16.msra.mxu1 %v1926_v23  ;;  %v574_v59 = vsub.f32 %v570_v50, %v572_v51  ;;  %v576_v61 = vmul.f32 0.5, %v2644_v11  ;;  %v775_v7 = vld [vmem:[%s2860_s19 + $0x8] sm:$0xff]  ;;  %vm2310_vm1 = vmmov 0   ;;  %v2311_v12 = vmov 0.0   ;;  %s2736_s21 = scalar_lea.vmem [#allocation11], %s1952_s15  ;;  %s2868_s15 = sld [smem:[#allocation17_spill]] }
  0xb4   : > { %v1777_v26 = vadd.f32 -128.0, %v565_v24  ;;  %v1778_v27 = vadd.f32 -128.0, %v566_v25  ;;  %1935 = vmatprep.subr.bf16.mxu1 %v1934_v35  ;;  %v577_v1 = vadd.f32 %v575_v60, %v573_v56  ;;  %vm1100_vm2 = vcmask 64512   ;;  %v1090_v24 = vld [vmem:[#allocation10] sm:$0xff]  ;;  %s1629_s18 = sshll.u32 %s2736_s21, 4  ;;  %s2869_s14 = sld [smem:[#allocation26_spill]]  ;;  %s2752_s18 = int_to_ptr.vmem [resolvable:$true] %s1629_s18 }
  0xb5   : > { %v578_v2 = vadd.f32 %v576_v61, %v574_v59  ;;  %s2210_s28 = scalar_lea.vmem %s2752_s18, 768  ;;  %s2312_s6 = smov [#allocation11]  }
  0xb6   : > { %v1922_v28 = vpack.c.bf16 %v1778_v27, %v1777_v26  ;;  %s2863_s13 = smov %s2862_s25  ;;  %v757_v55 = vld [vmem:[%s2862_s25 + $0x8] sm:$0xff]  ;;  %s2865_s25 = sld [smem:[#allocation22_spill]] }
  0xb7   : > { %v756_v58 = vld [vmem:[%s2863_s13] sm:$0xff]  ;;  %v1939_v8 = vpack.c.bf16 %v578_v2, %v577_v1  ;;  %p2211_p2 = scmp.ne.s32.totalorder %s2752_s18, %s2210_s28 }
  0xb8   : > { %1923 = vmatprep.subr.bf16.mxu0 %v1922_v28  ;;  %v1014_v14 = vld [vmem:[%s2864_s9] sm:$0xff]  ;;  %v1015_v15 = vld [vmem:[%s2864_s9 + $0x8] sm:$0xff] }
  0xb9   : > { %1925 = vmatpush3.bf16.msra.mxu0 %v1922_v28  ;;  %v1942_v17 = vpack.c.bf16 %v1015_v15, %v1014_v14  ;;  %v579_v28 = vmul.f32 0.5, %v2634_v3  ;;  %v1089_v3 = vld [vmem:[%s2867_s17] sm:$0xff]  ;;  %s1957_s16 = smul.u32 768, %s2868_s15  ;;  %p2212_p8 = pnand %p2211_p2, %p2560_p5 }
  0xba   : > { %s2214_s15 = sshll.u32 %s2312_s6, 4  ;;  %s2215_s15 = int_to_ptr.vmem [resolvable:$false] %s2214_s15 }
  0xbb   : > { %s2750_s3 = scalar_lea.hbm %s2869_s14, %s1957_s16  ;;  %p2213_p10 = pneg %p2212_p8 }
  0xbc   : > { %1851 = vmatmul.mubr.msk.f32.vlgmr.msra.gmra.mrb[0].mxu0 %vm591_vm0, %v590_v29  ;;  %s2866_s22 = smov %s2865_s25  ;;  %v1098_v21 = vld [vmem:[%s2865_s25] sm:$0xff]  ;;  %v580_v29 = vmul.f32 0.5, %v2636_v4  ;;  %s2216_s16 = scalar_lea.vmem %s2215_s15, 1536 }
  0xbd   : > { %1864 = vmatprep.mubr.msk.f32.mxu0 %vm591_vm0, %v774_v32  ;;  %p2217_p3 = scmp.lt.s32.totalorder %s2752_s18, %s2215_s15  ;;  %p2218_p7 = scmp.lt.s32.totalorder %s2216_s16, %s2210_s28 }
  0xbf   : > { %p2219_p9 = por %p2218_p7, %p2217_p3 }
  0xc1   : > { %p2220_p0 = pnand %p2219_p9, %p2213_p10 }
 0x18f   : > { %v1852_v30 = vpop.f32.mrb[0].mxu0 }
 0x190   : > { %v664_v31 = vpop.f32.mrb[1].mxu0 }
 0x191   : > { %1857 = vmatprep.mubr.msk.f32.mxu1 %vm591_vm0, %v664_v31  ;;  %v582_v31 = vmul.f32 0.418688, %v2640_v9  ;;  %v1099_v9 = vld [vmem:[%s2866_s22 + $0x8] sm:$0xff] }
 0x192   : > { %1858 = vmatmul.mubr.msk.f32.vlgmr.msra.gmra.mrb[0].mxu1 %vm591_vm0, %v1852_v30  ;;  %v581_v30 = vmul.f32 0.418688, %v2638_v6 }
 0x193   : > { %1937 = vmatpush3.bf16.msra.mxu1 %v1934_v35  ;;  %v584_v35 = vsub.f32 %v580_v29, %v582_v31 }
 0x194   : > { %1941 = vmatprep.subr.bf16.mxu1 %v2309_v36  ;;  %v583_v34 = vsub.f32 %v579_v28, %v581_v30 }
 0x265   : > { %v1859_v39 = vpop.f32.mrb[0].mxu1 }
 0x266   : > { %v761_v40 = vmul.f32 %v1859_v39, %v759_v37  ;;  %v747_v41 = vpop.f32.mrb[1].mxu1  ;;  %v585_v37 = vmul.f32 0.081312, %v2642_v10  ;;  %v1182_v10 = vld [vmem:[#allocation8] sm:$0xff] }
 0x267   : > { %v760_v42 = vmul.f32 %v758_v38, %v747_v41  ;;  %v586_v38 = vmul.f32 0.081312, %v2644_v11 }
 0x268   : > { %v1954_v43 = vround.rtne.f32 %v761_v40  ;;  %v587_v41 = vsub.f32 %v583_v34, %v585_v37 }
 0x269   : > { %v1953_v44 = vround.rtne.f32 %v760_v42  ;;  %v588_v4 = vsub.f32 %v584_v35, %v586_v38 }
 0x26a   : > { %v765_v45 = vsub.f32 %v761_v40, %v1954_v43 }
 0x26b   : > { %v764_v46 = vsub.f32 %v760_v42, %v1953_v44 }
 0x26c   : > { %v767_v49 = vmul.f32 %v765_v45, %v765_v45 }
 0x26d   : > { %v766_v52 = vmul.f32 %v764_v46, %v764_v46 }
 0x26e   : > { %v769_v53 = vmul.f32 %v767_v49, %v765_v45 }
 0x26f   : > { %v768_v54 = vmul.f32 %v766_v52, %v764_v46 }
 0x270   : > { %v771_v57 = vadd.f32 %v1954_v43, %v769_v53  ;;  %v1945_v43 = vpack.c.bf16 %v588_v4, %v587_v41 }
 0x271   : > { %v770_v62 = vadd.f32 %v1953_v44, %v768_v54 }
 0x272   : > { %v773_v63 = vmul.f32 %v771_v57, %v757_v55 }
 0x273   : > { %v772_v0 = vmul.f32 %v770_v62, %v756_v58 }
 0x275   : > { %v1930_v5 = vpack.c.bf16 %v773_v63, %v772_v0 }
 0x277   : > { %1931 = vmatprep.subr.bf16.mxu0 %v1930_v5 }
 0x278   : > { %1933 = vmatpush3.bf16.msra.mxu0 %v1930_v5 }
 0x279   : > { %1938 = vmatprep.subr.bf16.mxu0 %v2309_v36 }
 0x27b   : > { %1865 = vmatmul.mubr.msk.f32.vlgmr.msra.gmra.mrb[2].mxu0 %vm591_vm0, %v775_v7 }
 0x27c   : > { %1940 = vmatpush3.bf16.msra.mxu0 %v1939_v8  ;;  %1878 = vmatprep.mubr.msk.f32.mxu0 %vm2310_vm1, %v2311_v12 }
 0x27f   : > { %1879 = vmatmul.mubr.msk.f32.vlgmr.msra.gmra.mrb[4].mxu0 %vm591_vm0, %v940_v13 }
 0x280   : > { %1890 = vmatprep.mubr.msk.f32.mxu0 %vm1100_vm2, %v1098_v21 }
 0x34e   : > { %v1866_v16 = vpop.f32.mrb[2].mxu0 }
 0x34f   : > { %v848_v18 = vpop.f32.mrb[3].mxu0 }
 0x350   : > { %1871 = vmatprep.mubr.msk.f32.mxu1 %vm591_vm0, %v848_v18 }
 0x351   : > { %1872 = vmatmul.mubr.msk.f32.vlgmr.msra.gmra.mrb[2].mxu1 %vm591_vm0, %v1866_v16 }
 0x352   : > { %1943 = vmatpush3.bf16.msra.mxu1 %v1942_v17  ;;  %v1010_v19 = vpop.f32.mrb[4].mxu0  ;;  %1885 = vmatprep.mubr.msk.f32.mxu1 %vm2310_vm1, %v2311_v12 }
 0x353   : > { %v1880_v20 = vpop.f32.mrb[5].mxu0  ;;  %1893 = vmatprep.subr.mxu1 %v1182_v10 }
 0x355   : > { %1886 = vmatmul.mubr.msk.f32.vlgmr.msra.gmra.mrb[4].mxu1 %vm591_vm0, %v1010_v19 }
 0x356   : > { %1894 = vmatpush3.msra.mxu1 %v1182_v10 }
 0x357   : > { %1947 = vmatprep.subr.bf16.mxu1 %v2309_v36 }
 0x424   : > { %v1873_v22 = vpop.f32.mrb[2].mxu1 }
 0x425   : > { %v931_v23 = vpop.f32.mrb[3].mxu1  ;;  %v937_v48 = vadd.f32 128.0, %v1873_v22 }
 0x428   : > { %v1085_v25 = vpop.f32.mrb[4].mxu1 }
 0x429   : > { %v1091_v26 = vmul.f32 %v1090_v24, %v1085_v25  ;;  %v1887_v27 = vpop.f32.mrb[5].mxu1 }
 0x42b   : > { %v1955_v32 = vround.rtne.f32 %v1091_v26 }
 0x42d   : > { %v1093_v33 = vsub.f32 %v1091_v26, %v1955_v32 }
 0x42f   : > { %v1094_v39 = vmul.f32 %v1093_v33, %v1093_v33 }
 0x431   : > { %v1095_v40 = vmul.f32 %v1094_v39, %v1093_v33 }
 0x433   : > { %v1096_v42 = vadd.f32 %v1955_v32, %v1095_v40 }
 0x435   : > { %v1097_v6 = vmul.f32 %v1096_v42, %v1089_v3 }
 0x437   : > { %1888 = vmatprep.subr.mxu0 %v1097_v6 }
 0x438   : > { %1889 = vmatpush3.msra.mxu0 %v1097_v6 }
 0x439   : > { %1891 = vmatmul.mubr.msk.f32.vlgmr.msra.gmra.mrb[6].mxu0 %vm1100_vm2, %v1099_v9  ;;  %1944 = vmatprep.subr.bf16.mxu0 %v2309_v36  ;;  %v932_v36 = vadd.f32 128.0, %v931_v23 }
 0x43a   : > { %1946 = vmatpush3.bf16.msra.mxu0 %v1945_v43  ;;  %1902 = vmatprep.mubr.msk.f32.mxu0 %vm2310_vm1, %v2311_v12 }
 0x43d   : > { %1903 = vmatmul.mubr.msk.f32.vlgmr.msra.gmra.mrb[8].mxu0 %vm591_vm0, %v940_v13 }
 0x43e   : > { %1914 = vmatprep.mubr.msk.f32.mxu0 %vm1100_vm2, %v1098_v21 }
 0x50c   : > { %v1892_v11 = vpop.f32.mrb[6].mxu0 }
 0x50d   : > { %v1173_v44 = vpop.f32.mrb[7].mxu0 }
 0x50e   : > { %1895 = vmatprep.mubr.msk.f32.mxu1 %vm1100_vm2, %v1173_v44 }
 0x50f   : > { %1896 = vmatmul.mubr.msk.f32.vlgmr.msra.gmra.mrb[6].mxu1 %vm1100_vm2, %v1892_v11 }
 0x510   : > { %1949 = vmatpush3.bf16.msra.mxu1 %v1942_v17  ;;  %v1330_v45 = vpop.f32.mrb[8].mxu0  ;;  %1909 = vmatprep.mubr.msk.f32.mxu1 %vm2310_vm1, %v2311_v12 }
 0x511   : > { %v1904_v46 = vpop.f32.mrb[9].mxu0  ;;  %1917 = vmatprep.subr.mxu1 %v1182_v10 }
 0x513   : > { %1910 = vmatmul.mubr.msk.f32.vlgmr.msra.gmra.mrb[8].mxu1 %vm591_vm0, %v1330_v45 }
 0x514   : > { %1918 = vmatpush3.msra.mxu1 %v1182_v10 }
 0x5e2   : > { %v1897_v47 = vpop.f32.mrb[6].mxu1 }
 0x5e3   : > { %v1583_v49 = vmul.f32 1.772, %v1897_v47  ;;  %v1255_v50 = vpop.f32.mrb[7].mxu1  ;;  %v1575_v13 = vmul.f32 0.344136, %v1897_v47 }
 0x5e4   : > { %v1582_v51 = vmul.f32 1.772, %v1255_v50  ;;  %v1574_v14 = vmul.f32 0.344136, %v1255_v50 }
 0x5e5   : > { %v1585_v52 = vadd.f32 %v1583_v49, %v937_v48  ;;  %v1577_v16 = vsub.f32 %v937_v48, %v1575_v13 }
 0x5e6   : > { %v1584_v53 = vadd.f32 %v1582_v51, %v932_v36  ;;  %v1403_v54 = vpop.f32.mrb[8].mxu1  ;;  %v1576_v20 = vsub.f32 %v932_v36, %v1574_v14 }
 0x5e7   : > { %v1604_v55 = vmax.f32 %v1585_v52, 0.0  ;;  %v1407_v56 = vmul.f32 %v1403_v54, %v1090_v24  ;;  %v1911_v57 = vpop.f32.mrb[9].mxu1 }
 0x5e8   : > { %v1603_v58 = vmax.f32 %v1584_v53, 0.0 }
 0x5e9   : > { %v1606_v59 = vmin.f32 %v1604_v55, 255.0  ;;  %v1956_v60 = vround.rtne.f32 %v1407_v56 }
 0x5ea   : > { %v1605_v61 = vmin.f32 %v1603_v58, 255.0 }
 0x5eb   : > { %v1608_v62 = vmul.f32 0.003921569, %v1606_v59  ;;  %v1409_v63 = vsub.f32 %v1407_v56, %v1956_v60 }
 0x5ec   : > { %v1607_v0 = vmul.f32 0.003921569, %v1605_v61 }
 0x5ed   : > { %1802 = vst.msk [vmem:[%s2736_s21 + $0x28] sm:$0xff] %vm591_vm0, %v1608_v62  ;;  %v1410_v1 = vmul.f32 %v1409_v63, %v1409_v63 }
 0x5ee   : > { %1801 = vst.msk [vmem:[%s2736_s21 + $0x20] sm:$0xff] %vm591_vm0, %v1607_v0 }
 0x5ef   : > { %v1411_v2 = vmul.f32 %v1410_v1, %v1409_v63 }
 0x5f1   : > { %v1412_v5 = vadd.f32 %v1956_v60, %v1411_v2 }
 0x5f3   : > { %v1413_v7 = vmul.f32 %v1412_v5, %v1089_v3 }
 0x5f5   : > { %1912 = vmatprep.subr.mxu0 %v1413_v7 }
 0x5f6   : > { %1913 = vmatpush3.msra.mxu0 %v1413_v7 }
 0x5f7   : > { %1915 = vmatmul.mubr.msk.f32.vlgmr.msra.gmra.mrb[10].mxu0 %vm1100_vm2, %v1099_v9 }
 0x6ca   : > { %v1916_v8 = vpop.f32.mrb[10].mxu0 }
 0x6cb   : > { %v1480_v12 = vpop.f32.mrb[11].mxu0 }
 0x6cc   : > { %1919 = vmatprep.mubr.msk.f32.mxu1 %vm1100_vm2, %v1480_v12 }
 0x6cd   : > { %1920 = vmatmul.mubr.msk.f32.vlgmr.msra.gmra.mrb[10].mxu1 %vm1100_vm2, %v1916_v8 }
 0x7a0   : > { %v1921_v15 = vpop.f32.mrb[10].mxu1 }
 0x7a1   : > { %v1571_v17 = vmul.f32 1.402, %v1921_v15  ;;  %v1579_v18 = vmul.f32 0.714136, %v1921_v15  ;;  %v1561_v19 = vpop.f32.mrb[11].mxu1 }
 0x7a2   : > { %v1570_v21 = vmul.f32 1.402, %v1561_v19  ;;  %v1578_v22 = vmul.f32 0.714136, %v1561_v19 }
 0x7a3   : > { %v1573_v23 = vadd.f32 %v1571_v17, %v937_v48  ;;  %v1581_v24 = vsub.f32 %v1577_v16, %v1579_v18 }
 0x7a4   : > { %v1572_v25 = vadd.f32 %v1570_v21, %v932_v36  ;;  %v1580_v26 = vsub.f32 %v1576_v20, %v1578_v22 }
 0x7a5   : > { %v1587_v27 = vmax.f32 %v1573_v23, 0.0  ;;  %v1595_v28 = vmax.f32 %v1581_v24, 0.0 }
 0x7a6   : > { %v1586_v29 = vmax.f32 %v1572_v25, 0.0  ;;  %v1594_v30 = vmax.f32 %v1580_v26, 0.0 }
 0x7a7   : > { %v1589_v31 = vmin.f32 %v1587_v27, 255.0  ;;  %v1597_v32 = vmin.f32 %v1595_v28, 255.0 }
 0x7a8   : > { %v1588_v33 = vmin.f32 %v1586_v29, 255.0  ;;  %v1596_v34 = vmin.f32 %v1594_v30, 255.0 }
 0x7a9   : > { %v1591_v35 = vmul.f32 0.003921569, %v1589_v31  ;;  %v1599_v37 = vmul.f32 0.003921569, %v1597_v32 }
 0x7aa   : > { %v1590_v38 = vmul.f32 0.003921569, %v1588_v33  ;;  %v1598_v39 = vmul.f32 0.003921569, %v1596_v34 }
 0x7ab   : > { %1593 = vst.msk [vmem:[%s2736_s21 + $0x8] sm:$0xff] %vm591_vm0, %v1591_v35  ;;  %1800 = vst.msk [vmem:[%s2736_s21 + $0x18] sm:$0xff] %vm591_vm0, %v1599_v37 }
 0x7ac   : > { %1592 = vst.msk [vmem:[%s2736_s21] sm:$0xff] %vm591_vm0, %v1590_v38  ;;  %1799 = vst.msk [vmem:[%s2736_s21 + $0x10] sm:$0xff] %vm591_vm0, %v1598_v39 }
 0x7ad   : > { %2223 = shalt.err (!%p2220_p0)
}
 0x7ae   : > { %s2224_s21 = scalar_lea.hbm %s2750_s3, 768  ;;  %s2228_s6 = scalar_lea.hbm %s2869_s14, 1536 }
 0x7af   : > { %p2225_p4 = scmp.ne.s32.totalorder %s2750_s3, %s2224_s21  ;;  %p2229_p12 = scmp.lt.u32.totalorder %s2750_s3, %s2869_s14 }
 0x7b0   : > { %p2230_p1 = scmp.lt.u32.totalorder %s2228_s6, %s2224_s21  ;;  %p2232_p2 = scmp.lt.u32.totalorder %s2224_s21, %s2750_s3 }
 0x7b1   : > { %p2226_p13 = pnand %p2225_p4, %p2560_p5 }
 0x7b2   : > { %p2231_p11 = por %p2230_p1, %p2229_p12 }
 0x7b3   : > { %p2227_p6 = pneg %p2226_p13 }
 0x7b4   : > { %p2233_p8 = por %p2232_p2, %p2231_p11 }
 0x7b6   : > { %p2234_p10 = pnand %p2233_p8, %p2227_p6 }
 0x7b8   : > { %2237 = shalt.err (!%p2234_p10)
}
 0x7b9   : > { %s2313_s28 = smov 128   ;;  %s2314_s16 = smov 8  }
 0x7ba   : > { %s2870_s0 = scalar_lea.sflag [#allocation4], %s2616_s10 }
 0x7bb   : > { %1976 = dma.vmem_to_hbm [thread:$0]  (%p2560_p5), %s2752_s18, 768, %s2750_s3, %s2870_s0, %s2313_s28, %s2313_s28, %s2314_s16  }
 0x7bc PF: > { %s2871_s20 = sld [smem:[#allocation16_spill]]  ;;  %s2872_s25 = sld [smem:[#allocation18_spill]] }
 0x7bd   : > { %p2874_p7 = scmp.ge.s32.totalorder %s2300_s30, 2 }
 0x7c2   : > { %s1644_s17 = sand.u32 1, %s2871_s20   ;;  %p2873_p3 = scmp.ne.s32.totalorder %s2872_s25, 0 }
 0x7c3   : > { %s1645_s21 = scalar_lea.sflag [#allocation4], %s1644_s17 }
 0x7c4   : > { %p1996_p9 = pnand %p2874_p7, %p2873_p3 }
 0x7c6   : > { %2275 = dma.done.wait (!%p1996_p9), %s1645_s21, 768  }
 0x7c7   : > { %2277 = vsyncadd (!%p1996_p9), %s1645_s21, 4294966528  ;;  %s31_s30 = sadd.s32 1, %s2300_s30   ;;  %s2875_s25 = smov %s2284_s26 }
 0x7c8   : > { %p28_p0 = scmp.ge.s32.totalorder %s31_s30, 4   ;;  %s2876_s26 = smov %s2288_s27 }
 0x7c9   : > { %s2877_s27 = smov %s2572_s24  ;;  %s2878_s28 = smov %s2296_s29 }
 0x7ca   : > { %s2879_s29 = smov %s2881_s7  ;;  %30 = sbr.rel (!%p28_p0) target bundleno = 17 (0x11), region = 137 }
 0x7d1   :  { %1650 = vsyncpa [#allocation3], 1 }
 0x7d2   :  { %1652 = vsyncpa [#allocation3 + $0x1], 1 }
 0x7d3   :  { %1653 = vsyncpa [#allocation6], 1 }
 0x7d4   :  { %1654 = vsyncpa [#allocation9], 1 }
 0x7d5   :  { %1655 = vsyncpa [#allocation4], 1 }
 0x7d6   :  { %1657 = vsyncpa [#allocation4 + $0x1], 1 }

</bundles_post_ra>
